<compile_context>
chip_gen: v7x
topology: tpu7x:2x2x1
jax: 0.10.0
libtpu: 0.0.40
codegen_flags: <defaults>
</compile_context>

<pallas_src>
import functools

import jax
import jax.numpy as jnp
from jax.experimental import pallas as pl
from jax.experimental.pallas import tpu as pltpu


def _fusion_kernel(scale_ref, alpha_ref, fore_ref, back_ref, out_ref, *, W, L, n_tiles):
    # scale_ref : SMEM (1,) f32   -- uniform conv weight (1/9 in the module).
    # alpha_ref : VMEM (1, 1, (H+2)*W + 2) -- zero-row-padded, flattened alpha
    #             with a 1-element guard at each end; resident across tiles.
    # fore/back/out_ref : VMEM (1, C, L) lane-dense tiles, L = TH * W.
    if n_tiles == 1:
        start0 = 1                                     # static slices only
    else:
        # L is a multiple of 128 whenever n_tiles > 1 (see _pick_tile_rows).
        start0 = pl.multiple_of(pl.program_id(1) * L, 128) + 1

    def ld(off):
        # (1, L) window of the padded flat alpha, f32.
        return alpha_ref[0, :, pl.ds(start0 + off, L)].astype(jnp.float32)

    # 3x3 box sum as 9 shifted windows.  Vertical (+-W) taps hit the zero pad
    # rows at the image top/bottom; horizontal (+-1) taps wrap across rows in
    # the flat view and are masked out at the image's left/right columns.
    c_m1 = ld(-1) + ld(W - 1) + ld(2 * W - 1)          # dx = -1, dy = -1..1
    c_0 = ld(0) + ld(W) + ld(2 * W)                    # dx =  0
    c_p1 = ld(1) + ld(W + 1) + ld(2 * W + 1)           # dx = +1

    col = jax.lax.broadcasted_iota(jnp.int32, (1, L), 1) % W
    box = c_0 + jnp.where(col != 0, c_m1, 0.0) + jnp.where(col != W - 1, c_p1, 0.0)

    # Uniform weight -> single scalar multiply (module fills weight with 1/9).
    a = (box * scale_ref[0]).astype(fore_ref.dtype)    # smoothed alpha, (1, L)

    f = fore_ref[0]                                    # (C, L)
    b = back_ref[0]                                    # (C, L)
    out_ref[0] = (b + a * (f - b)).astype(out_ref.dtype)   # == a*f + (1-a)*b


def _pick_tile_rows(C, H, W, itemsize):
    """Largest row-tile TH with H % TH == 0, (TH*W) % 128 == 0, within budget."""
    budget = 10 * 1024 * 1024          # double-buffered fore+back+out blocks
    max_th = max(1, budget // (6 * C * W * itemsize))
    if max_th >= H:
        return H
    for th in range(int(max_th), 0, -1):
        if H % th == 0 and (th * W) % 128 == 0:
            return th
    return H  # fallback: single full-height tile (always a legal block)


def image_fusion(fore, back, alpha, weight):
    """fore, back: (N, C, H, W); alpha: (N, 1, H, W); weight: (3, 3) uniform."""
    N, C, H, W = fore.shape
    assert back.shape == fore.shape
    assert alpha.shape == (N, 1, H, W)

    # The module initializes the conv weight uniformly (1/9); the kernel uses
    # that single scalar (conv == box_sum * scale).
    scale = weight.reshape(-1)[:1].astype(jnp.float32)        # (1,) SMEM scalar

    # Zero-pad alpha with one row above/below, flatten spatially, and add a
    # one-element guard at each end so every stencil window stays in bounds.
    Lp = (H + 2) * W + 2
    alpha_flat = jnp.pad(alpha, ((0, 0), (0, 0), (1, 1), (0, 0)))
    alpha_flat = alpha_flat.reshape(N, 1, (H + 2) * W)
    alpha_flat = jnp.pad(alpha_flat, ((0, 0), (0, 0), (1, 1)))

    itemsize = jnp.dtype(fore.dtype).itemsize
    TH = _pick_tile_rows(C, H, W, itemsize)
    L = TH * W
    n_tiles = H // TH

    # Lane-dense views (free row-major reshapes in HBM).
    fore2 = fore.reshape(N, C, H * W)
    back2 = back.reshape(N, C, H * W)

    kernel = functools.partial(_fusion_kernel, W=W, L=L, n_tiles=n_tiles)

    out2 = pl.pallas_call(
        kernel,
        out_shape=jax.ShapeDtypeStruct((N, C, H * W), fore.dtype),
        grid=(N, n_tiles),
        in_specs=[
            pl.BlockSpec(memory_space=pltpu.MemorySpace.SMEM),       # scale (1,)
            pl.BlockSpec((1, 1, Lp), lambda b, t: (b, 0, 0)),        # alpha (resident per batch)
            pl.BlockSpec((1, C, L), lambda b, t: (b, 0, t)),         # fore
            pl.BlockSpec((1, C, L), lambda b, t: (b, 0, t)),         # back
        ],
        out_specs=pl.BlockSpec((1, C, L), lambda b, t: (b, 0, t)),
        compiler_params=pltpu.CompilerParams(
            dimension_semantics=("parallel", "parallel"),
            vmem_limit_bytes=32 * 1024 * 1024,
        ),
        cost_estimate=pl.CostEstimate(
            flops=int(N * H * W * (9 + 3 * C)),
            transcendentals=0,
            bytes_accessed=int(N * (3 * C * H * W * itemsize + Lp * 4) + 4),
        ),
    )(scale, alpha_flat, fore2, back2)

    return out2.reshape(N, C, H, W)


def _reference(fore, back, alpha, weight):
    # Pure-JAX reference of the PyTorch forward for sanity checking.
    a = jax.lax.conv_general_dilated(
        alpha, weight.reshape(1, 1, 3, 3),
        window_strides=(1, 1), padding=((1, 1), (1, 1)),
        dimension_numbers=("NCHW", "OIHW", "NCHW"))
    return a * fore + (1.0 - a) * back


if __name__ == "__main__":
    key = jax.random.PRNGKey(0)
    k1, k2, k3 = jax.random.split(key, 3)

    N, C, H, W = 2, 4, 16, 16
    fore = jax.random.normal(k1, (N, C, H, W), dtype=jnp.float32)
    back = jax.random.normal(k2, (N, C, H, W), dtype=jnp.float32)
    alpha = jax.random.uniform(k3, (N, 1, H, W), dtype=jnp.float32)

    # Deterministic parameter init, matching `self.avgpool.weight.data.fill_(1/9)`.
    weight = jnp.full((3, 3), 1.0 / 9.0, dtype=jnp.float32)

    out = jax.block_until_ready(image_fusion(fore, back, alpha, weight))
    ref = _reference(fore, back, alpha, weight)

    assert out.shape == (N, C, H, W)
    assert jnp.allclose(out, ref, atol=1e-5, rtol=1e-5), "mismatch vs reference"

    print("KERNEL_OK")
</pallas_src>

<mosaic_0001>
module attributes {stable_mosaic.version = 11 : i64} {
  func.func @_fusion_kernel(%arg0: i32, %arg1: i32, %arg2: memref<1xf32, #tpu.memory_space<smem>>, %arg3: memref<1x1x290xf32, #tpu.memory_space<vmem>>, %arg4: memref<1x4x256xf32, #tpu.memory_space<vmem>>, %arg5: memref<1x4x256xf32, #tpu.memory_space<vmem>>, %arg6: memref<1x4x256xf32, #tpu.memory_space<vmem>>) attributes {dimension_semantics = [#tpu.dimension_semantics<parallel>, #tpu.dimension_semantics<parallel>], iteration_bounds = array<i64: 2, 1>, scalar_prefetch = 0 : i64, scratch_operands = 0 : i64, tpu.core_type = #tpu.core_type<tc>, window_params = [{transform_indices = @transform_0, window_bounds = array<i64: 1>}, {transform_indices = @transform_1, window_bounds = array<i64: 1, 1, 290>}, {transform_indices = @transform_2, window_bounds = array<i64: 1, 4, 256>}, {transform_indices = @transform_3, window_bounds = array<i64: 1, 4, 256>}, {transform_indices = @transform_4, window_bounds = array<i64: 1, 4, 256>}]} {
    %c0 = arith.constant 0 : index
    %c0_0 = arith.constant 0 : index
    %c0_1 = arith.constant 0 : index
    %0 = vector.load %arg3[%c0, %c0_0, %c0_1] : memref<1x1x290xf32, #tpu.memory_space<vmem>>, vector<1x1x256xf32>
    %1 = vector.shape_cast %0 : vector<1x1x256xf32> to vector<1x256xf32>
    %c0_2 = arith.constant 0 : index
    %c0_3 = arith.constant 0 : index
    %c16 = arith.constant 16 : index
    %2 = vector.load %arg3[%c0_2, %c0_3, %c16] : memref<1x1x290xf32, #tpu.memory_space<vmem>>, vector<1x1x256xf32>
    %3 = vector.shape_cast %2 : vector<1x1x256xf32> to vector<1x256xf32>
    %4 = arith.addf %1, %3 : vector<1x256xf32>
    %c0_4 = arith.constant 0 : index
    %c0_5 = arith.constant 0 : index
    %c32 = arith.constant 32 : index
    %5 = vector.load %arg3[%c0_4, %c0_5, %c32] : memref<1x1x290xf32, #tpu.memory_space<vmem>>, vector<1x1x256xf32>
    %6 = vector.shape_cast %5 : vector<1x1x256xf32> to vector<1x256xf32>
    %7 = arith.addf %4, %6 : vector<1x256xf32>
    %c0_6 = arith.constant 0 : index
    %c0_7 = arith.constant 0 : index
    %c1 = arith.constant 1 : index
    %8 = vector.load %arg3[%c0_6, %c0_7, %c1] : memref<1x1x290xf32, #tpu.memory_space<vmem>>, vector<1x1x256xf32>
    %9 = vector.shape_cast %8 : vector<1x1x256xf32> to vector<1x256xf32>
    %c0_8 = arith.constant 0 : index
    %c0_9 = arith.constant 0 : index
    %c17 = arith.constant 17 : index
    %10 = vector.load %arg3[%c0_8, %c0_9, %c17] : memref<1x1x290xf32, #tpu.memory_space<vmem>>, vector<1x1x256xf32>
    %11 = vector.shape_cast %10 : vector<1x1x256xf32> to vector<1x256xf32>
    %12 = arith.addf %9, %11 : vector<1x256xf32>
    %c0_10 = arith.constant 0 : index
    %c0_11 = arith.constant 0 : index
    %c33 = arith.constant 33 : index
    %13 = vector.load %arg3[%c0_10, %c0_11, %c33] : memref<1x1x290xf32, #tpu.memory_space<vmem>>, vector<1x1x256xf32>
    %14 = vector.shape_cast %13 : vector<1x1x256xf32> to vector<1x256xf32>
    %15 = arith.addf %12, %14 : vector<1x256xf32>
    %c0_12 = arith.constant 0 : index
    %c0_13 = arith.constant 0 : index
    %c2 = arith.constant 2 : index
    %16 = vector.load %arg3[%c0_12, %c0_13, %c2] : memref<1x1x290xf32, #tpu.memory_space<vmem>>, vector<1x1x256xf32>
    %17 = vector.shape_cast %16 : vector<1x1x256xf32> to vector<1x256xf32>
    %c0_14 = arith.constant 0 : index
    %c0_15 = arith.constant 0 : index
    %c18 = arith.constant 18 : index
    %18 = vector.load %arg3[%c0_14, %c0_15, %c18] : memref<1x1x290xf32, #tpu.memory_space<vmem>>, vector<1x1x256xf32>
    %19 = vector.shape_cast %18 : vector<1x1x256xf32> to vector<1x256xf32>
    %20 = arith.addf %17, %19 : vector<1x256xf32>
    %c0_16 = arith.constant 0 : index
    %c0_17 = arith.constant 0 : index
    %c34 = arith.constant 34 : index
    %21 = vector.load %arg3[%c0_16, %c0_17, %c34] : memref<1x1x290xf32, #tpu.memory_space<vmem>>, vector<1x1x256xf32>
    %22 = vector.shape_cast %21 : vector<1x1x256xf32> to vector<1x256xf32>
    %23 = arith.addf %20, %22 : vector<1x256xf32>
    %24 = tpu.iota {dimensions = array<i32: 1>} : vector<1x256xi32>
    %c16_i32 = arith.constant 16 : i32
    %c0_i32 = arith.constant 0 : i32
    %25 = arith.cmpi eq, %c16_i32, %c0_i32 : i32
    %c1_i32 = arith.constant 1 : i32
    %26 = arith.select %25, %c1_i32, %c16_i32 : i32
    %27 = vector.broadcast %26 : i32 to vector<1x256xi32>
    %28 = arith.remsi %24, %27 : vector<1x256xi32>
    %c0_i32_18 = arith.constant 0 : i32
    %29 = vector.broadcast %c0_i32_18 : i32 to vector<1x256xi32>
    %30 = arith.cmpi ne, %28, %29 : vector<1x256xi32>
    %c0_i32_19 = arith.constant 0 : i32
    %31 = vector.broadcast %c0_i32_19 : i32 to vector<1x256xi32>
    %32 = arith.cmpi slt, %28, %31 : vector<1x256xi32>
    %c0_i32_20 = arith.constant 0 : i32
    %33 = arith.cmpi slt, %26, %c0_i32_20 : i32
    %34 = vector.broadcast %33 : i1 to vector<1x256xi1>
    %35 = vector.broadcast %34 : vector<1x256xi1> to vector<1x256xi1>
    %36 = arith.xori %32, %35 : vector<1x256xi1>
    %37 = arith.andi %36, %30 : vector<1x256xi1>
    %38 = vector.broadcast %26 : i32 to vector<1x256xi32>
    %39 = arith.addi %28, %38 : vector<1x256xi32>
    %40 = arith.select %37, %39, %28 : vector<1x256xi1>, vector<1x256xi32>
    %c0_i32_21 = arith.constant 0 : i32
    %41 = vector.broadcast %c0_i32_21 : i32 to vector<1x256xi32>
    %42 = arith.cmpi ne, %40, %41 : vector<1x256xi32>
    %cst = arith.constant 0.000000e+00 : f32
    %43 = vector.broadcast %cst : f32 to vector<1x256xf32>
    %44 = arith.select %42, %7, %43 : vector<1x256xi1>, vector<1x256xf32>
    %45 = arith.addf %15, %44 : vector<1x256xf32>
    %c15_i32 = arith.constant 15 : i32
    %46 = vector.broadcast %c15_i32 : i32 to vector<1x256xi32>
    %47 = arith.cmpi ne, %40, %46 : vector<1x256xi32>
    %cst_22 = arith.constant 0.000000e+00 : f32
    %48 = vector.broadcast %cst_22 : f32 to vector<1x256xf32>
    %49 = arith.select %47, %23, %48 : vector<1x256xi1>, vector<1x256xf32>
    %50 = arith.addf %45, %49 : vector<1x256xf32>
    %c0_23 = arith.constant 0 : index
    %51 = memref.load %arg2[%c0_23] : memref<1xf32, #tpu.memory_space<smem>>
    %52 = vector.broadcast %51 : f32 to vector<1x256xf32>
    %53 = arith.mulf %50, %52 : vector<1x256xf32>
    %c0_24 = arith.constant 0 : index
    %c0_25 = arith.constant 0 : index
    %c0_26 = arith.constant 0 : index
    %54 = vector.load %arg4[%c0_24, %c0_25, %c0_26] : memref<1x4x256xf32, #tpu.memory_space<vmem>>, vector<1x4x256xf32>
    %55 = vector.shape_cast %54 : vector<1x4x256xf32> to vector<4x256xf32>
    %c0_27 = arith.constant 0 : index
    %c0_28 = arith.constant 0 : index
    %c0_29 = arith.constant 0 : index
    %56 = vector.load %arg5[%c0_27, %c0_28, %c0_29] : memref<1x4x256xf32, #tpu.memory_space<vmem>>, vector<1x4x256xf32>
    %57 = vector.shape_cast %56 : vector<1x4x256xf32> to vector<4x256xf32>
    %58 = arith.subf %55, %57 : vector<4x256xf32>
    %59 = vector.broadcast %53 : vector<1x256xf32> to vector<4x256xf32>
    %60 = arith.mulf %59, %58 : vector<4x256xf32>
    %61 = arith.addf %57, %60 : vector<4x256xf32>
    %c0_30 = arith.constant 0 : index
    %c0_31 = arith.constant 0 : index
    %c0_32 = arith.constant 0 : index
    %62 = vector.load %arg6[%c0_30, %c0_31, %c0_32] : memref<1x4x256xf32, #tpu.memory_space<vmem>>, vector<1x4x256xf32>
    %63 = vector.shape_cast %62 : vector<1x4x256xf32> to vector<4x256xf32>
    %64 = vector.shape_cast %61 : vector<4x256xf32> to vector<1x4x256xf32>
    tpu.vector_store %arg6[%c0_30, %c0_31, %c0_32], %64 {strides = array<i32>} : memref<1x4x256xf32, #tpu.memory_space<vmem>>, vector<1x4x256xf32>,
    return
  }
  func.func @transform_0(%arg0: i32, %arg1: i32) -> i32 {
    %c0_i32 = arith.constant 0 : i32
    %c0_i32_0 = arith.constant 0 : i32
    return %c0_i32 : i32
  }
  func.func @transform_1(%arg0: i32, %arg1: i32) -> (i32, i32, i32) {
    %c0_i32 = arith.constant 0 : i32
    %c0_i32_0 = arith.constant 0 : i32
    %c0_i32_1 = arith.constant 0 : i32
    return %arg0, %c0_i32, %c0_i32_0 : i32, i32, i32
  }
  func.func @transform_2(%arg0: i32, %arg1: i32) -> (i32, i32, i32) {
    %c0_i32 = arith.constant 0 : i32
    %c0_i32_0 = arith.constant 0 : i32
    return %arg0, %c0_i32, %arg1 : i32, i32, i32
  }
  func.func @transform_3(%arg0: i32, %arg1: i32) -> (i32, i32, i32) {
    %c0_i32 = arith.constant 0 : i32
    %c0_i32_0 = arith.constant 0 : i32
    return %arg0, %c0_i32, %arg1 : i32, i32, i32
  }
  func.func @transform_4(%arg0: i32, %arg1: i32) -> (i32, i32, i32) {
    %c0_i32 = arith.constant 0 : i32
    %c0_i32_0 = arith.constant 0 : i32
    return %arg0, %c0_i32, %arg1 : i32, i32, i32
  }
}

</mosaic_0001>

<bundles_post_ra>
// kernel: tpu_custom_call.1
= control target key start
LH: loop header
LB: loop body
LE: loop exit
PB: predicated region body
PF: predicated region fallthrough
CT: control target
= control target key end

     0   :  { %s1246_s0 = inlined_call_operand.<no memory space> [shape: f32[1], index: 0, kind: input, shape index: {}]   ;;  %s1247_s1 = inlined_call_operand.hbm [shape: f32[2,1,290], index: 1, kind: input, shape index: {}]   ;;  %s1248_s2 = inlined_call_operand.hbm [shape: f32[2,4,256], index: 2, kind: input, shape index: {}]   ;;  %s1249_s3 = inlined_call_operand.hbm [shape: f32[2,4,256], index: 3, kind: input, shape index: {}]   ;;  %s1250_s4 = inlined_call_operand.hbm [shape: f32[2,4,256], index: 4, kind: output, shape index: {}]  }
   0x1   :  { %1257 = sst [smem:[#allocation16_spill]] %s1248_s2 }
   0x2   :  { %9 = sst [smem:[#allocation2]] %s1246_s0 }
   0x3   :  { %10 = vsyncpa [#allocation4], 0 }
   0x4   :  { %12 = vsyncpa [#allocation4 + $0x1], 0 }
   0x5   :  { %13 = vsyncpa [#allocation7], 0 }
   0x6   :  { %15 = vsyncpa [#allocation7 + $0x1], 0 }
   0x7   :  { %16 = vsyncpa [#allocation5], 0 }
   0x8   :  { %18 = vsyncpa [#allocation5 + $0x1], 0  ;;  %s968_s17 = smov 0   ;;  %s970_s18 = smov 0  }
   0x9   :  { %s972_s19 = smov 0   ;;  %s974_s20 = smov 0  }
   0xa   :  { %s976_s21 = smov 0   ;;  %s978_s22 = smov 0  }
   0xb LB: > { %1258 = sst [smem:[#allocation13_spill]] %s924_s21  ;;  %s999_s0 = sadd.s32 4294967295, %s928_s22   ;;  %s928_s22 = sphi %s978_s22, %s24_s22   ;;  %s924_s21 = sphi %s976_s21, %s1277_s21   ;;  %s920_s20 = sphi %s974_s20, %s1276_s20   ;;  %s916_s19 = sphi %s972_s19, %s1280_s19   ;;  %s912_s18 = sphi %s970_s18, %s1279_s18   ;;  %s908_s17 = sphi %s968_s17, %s1278_s17  }
   0xc   : > { %s649_s23 = sadd.s32 4294967294, %s928_s22   ;;  %s36_s24 = sadd.s32 1, %s924_s21 }
   0xd   : > { %s64_s25 = sadd.s32 1, %s916_s19  ;;  %p38_p0 = scmp.ge.s32.totalorder %s36_s24, 2 }
   0xe   : > { %p71_p1 = scmp.ne.s32.totalorder %s916_s19, %s912_s18  ;;  %p72_p2 = scmp.eq.s32.totalorder %s928_s22, 0 }
   0xf   : > { %p77_p3 = scmp.ne.s32.totalorder %s912_s18, %s908_s17  ;;  %s1282_s24 = smov (%p38_p0, %s36_s24), 0 }
  0x10   : > { %1259 = sst [smem:[#allocation14_spill]] %s1282_s24  ;;  %p1011_p4 = por %p72_p2, %p71_p1 }
  0x11   : > { %p78_p5 = scmp.eq.s32.totalorder %s999_s0, 0  ;;  %s61_s27 = ssub.s32 %s924_s21, %s1282_s24 }
  0x12   : > { %p159_p6 = scmp.eq.s32.totalorder %s999_s0, 1  ;;  %p62_p7 = scmp.eq.s32.totalorder %s61_s27, 0 }
  0x13   : > { %p1019_p8 = por %p78_p5, %p77_p3  ;;  %p165_p10 = scmp.eq.s32.totalorder %s649_s23, 1 }
  0x14   : > { %p1023_p9 = por %p159_p6, %p71_p1  ;;  %p696_p13 = scmp.lt.s32.totalorder %s928_s22, 2 }
  0x15   : > { %s1261_s28 = scalar_select %p1019_p8, 1, 0 }
  0x16   : > { %s1262_s29 = scalar_select %p1023_p9, 1, 0 }
  0x17   : > { %s1028_s30 = scalar_select %p62_p7, %s916_s19, %s64_s25  }
  0x18   : > { %p1030_p11 = por %p165_p10, %p77_p3  ;;  %s1037_s6 = sand.u32 1, %s916_s19  }
  0x19   : > { %1263 = sst [smem:[#allocation15_spill]] %s1028_s30  ;;  %s207_s7 = sand.u32 1, %s928_s22  }
  0x1a   : > { %s1264_s5 = scalar_select %p1030_p11, 1, 0 }
  0x1b   : > { %s653_s8 = sshll.u32 %s1037_s6, 3  ;;  %p1043_p0 = pnand %p696_p13, %p1011_p4 }
  0x1c   : > { %s668_s10 = sshll.u32 %s924_s21, 7  ;;  %s1266_s2 = sld [smem:[#allocation16_spill]] }
  0x1d   : > { %s1265_s9 = scalar_select %p1043_p0, 1, 0 }
  0x1e   : > { %s211_s14 = scalar_lea.vmem [#allocation6], %s653_s8  ;;  %s1059_s16 = scalar_lea.sflag [#allocation7], %s207_s7 }
  0x1f   : > { %s221_s15 = sshll.u32 %s211_s14, 4  ;;  %p1065_p2 = pneg %p1043_p0  ;;  %s1057_s15 = int_to_ptr.vmem [resolvable:$true] %s221_s15 }
  0x22   : > { %s1053_s13 = scalar_lea.hbm %s1266_s2, %s668_s10  ;;  %s757_s11 = scalar_lea.hbm %s1266_s2, 256 }
  0x23   : > { %s752_s23 = scalar_lea.hbm %s1053_s13, 128  ;;  %p758_p5 = scmp.lt.u32.totalorder %s1053_s13, %s1266_s2 }
  0x24   : > { %p753_p1 = scmp.ne.s32.totalorder %s1053_s13, %s752_s23  ;;  %p759_p6 = scmp.lt.u32.totalorder %s757_s11, %s752_s23 }
  0x25   : > { %p761_p10 = scmp.lt.u32.totalorder %s752_s23, %s1053_s13 }
  0x26   : > { %p755_p3 = pnand %p1065_p2, %p753_p1  ;;  %p760_p7 = por %p759_p6, %p758_p5 }
  0x28   : > { %p756_p4 = pneg %p755_p3  ;;  %p762_p13 = por %p761_p10, %p760_p7 }
  0x2a   : > { %p763_p12 = pnand %p762_p13, %p756_p4 }
  0x2c   : > { %766 = shalt.err (!%p763_p12)
}
  0x2d   : > { %s767_s7 = scalar_lea.vmem %s1057_s15, 128  ;;  %s930_s26 = smov [#allocation6]  }
  0x2e   : > { %p768_p1 = scmp.ne.s32.totalorder %s1057_s15, %s767_s7  ;;  %s772_s27 = sshll.u32 %s930_s26, 4  ;;  %s773_s27 = int_to_ptr.vmem [resolvable:$false] %s772_s27 }
  0x2f   : > { %s774_s12 = scalar_lea.vmem %s773_s27, 256  ;;  %p775_p9 = scmp.lt.s32.totalorder %s1057_s15, %s773_s27 }
  0x30   : > { %p770_p3 = pnand %p768_p1, %p1065_p2  ;;  %p776_p8 = scmp.lt.s32.totalorder %s774_s12, %s767_s7 }
  0x32   : > { %p771_p11 = pneg %p770_p3  ;;  %p777_p5 = por %p776_p8, %p775_p9 }
  0x34   : > { %p778_p6 = pnand %p777_p5, %p771_p11 }
  0x36   : > { %781 = shalt.err (!%p778_p6)
}
  0x37   : > { %688 = dma.hbm_to_vmem [thread:$0]  (!%p1043_p0), %s1053_s13, 128, %s1057_s15, %s1059_s16  }
  0x38   : > { %p659_p12 = scmp.ge.s32.totalorder %s928_s22, 1  ;;  %p247_p4 = scmp.lt.s32.totalorder %s928_s22, 3 }
  0x39   : > { %s1096_s14 = scalar_lea.hbm %s1249_s3, %s668_s10  ;;  %s671_s26 = smul.u32 3, %s1037_s6 }
  0x3a   : > { %p1098_p8 = pnand %p659_p12, %p247_p4  ;;  %s232_s27 = scalar_lea.vmem [#allocation8], %s653_s8 }
  0x3b   : > { %s242_s12 = sshll.u32 %s232_s27, 4  ;;  %s672_s2 = smul.u32 48, %s924_s21  ;;  %s1106_s12 = int_to_ptr.vmem [resolvable:$true] %s242_s12 }
  0x3c   : > { %s1268_s7 = scalar_select %p1098_p8, 1, 0 }
  0x3d   : > { %s1111_s24 = scalar_lea.hbm %s1247_s1, %s672_s2  ;;  %s192_s10 = scalar_lea.vmem [#allocation3], %s671_s26 }
  0x3e   : > { %s200_s23 = sshll.u32 %s192_s10, 4  ;;  %s189_s11 = scalar_lea.sflag [#allocation4], %s1037_s6  ;;  %s201_s23 = int_to_ptr.vmem [resolvable:$true] %s200_s23 }
  0x3f   : > { %s782_s30 = scalar_lea.hbm %s1111_s24, 48  ;;  %s787_s21 = scalar_lea.hbm %s1247_s1, 96 }
  0x40   : > { %p783_p9 = scmp.ne.s32.totalorder %s1111_s24, %s782_s30  ;;  %p788_p10 = scmp.lt.u32.totalorder %s1111_s24, %s1247_s1 }
  0x41   : > { %p789_p13 = scmp.lt.u32.totalorder %s787_s21, %s782_s30  ;;  %p791_p3 = scmp.lt.u32.totalorder %s782_s30, %s1111_s24 }
  0x42   : > { %p785_p11 = pnand %p783_p9, %p1065_p2 }
  0x43   : > { %p790_p1 = por %p789_p13, %p788_p10 }
  0x44   : > { %p786_p7 = pneg %p785_p11 }
  0x45   : > { %p792_p5 = por %p791_p3, %p790_p1 }
  0x47   : > { %p793_p6 = pnand %p792_p5, %p786_p7 }
  0x49   : > { %796 = shalt.err (!%p793_p6)
}
  0x4a   : > { %s797_s6 = scalar_lea.vmem %s201_s23, 48  ;;  %s931_s26 = smov [#allocation3]  }
  0x4b   : > { %p798_p12 = scmp.ne.s32.totalorder %s201_s23, %s797_s6  ;;  %s802_s15 = sshll.u32 %s931_s26, 4  ;;  %s803_s15 = int_to_ptr.vmem [resolvable:$false] %s802_s15 }
  0x4c   : > { %s804_s10 = scalar_lea.vmem %s803_s15, 96  ;;  %p805_p11 = scmp.lt.s32.totalorder %s201_s23, %s803_s15 }
  0x4d   : > { %p800_p4 = pnand %p798_p12, %p1065_p2  ;;  %p806_p8 = scmp.lt.s32.totalorder %s804_s10, %s797_s6 }
  0x4f   : > { %p801_p9 = pneg %p800_p4  ;;  %p807_p0 = por %p806_p8, %p805_p11 }
  0x51   : > { %p808_p10 = pnand %p807_p0, %p801_p9 }
  0x53   : > { %811 = shalt.err (!%p808_p10)
}
  0x54   : > { %p1269_p13 = scmp.ne.s32.totalorder %s1265_s9, 0  ;;  %s812_s21 = scalar_lea.hbm %s1096_s14, 128 }
  0x55   : > { %p813_p7 = scmp.ne.s32.totalorder %s1096_s14, %s812_s21  ;;  %s817_s27 = scalar_lea.hbm %s1249_s3, 256 }
  0x56   : > { %685 = dma.hbm_to_vmem [thread:$0]  (!%p1269_p13), %s1111_s24, 48, %s201_s23, %s189_s11  }
  0x57   : > { %p815_p1 = pnand %p813_p7, %p1065_p2  ;;  %p818_p0 = scmp.lt.u32.totalorder %s1096_s14, %s1249_s3 }
  0x58   : > { %p819_p8 = scmp.lt.u32.totalorder %s817_s27, %s812_s21  ;;  %p821_p6 = scmp.lt.u32.totalorder %s812_s21, %s1096_s14 }
  0x59   : > { %p816_p3 = pneg %p815_p1 }
  0x5a   : > { %p820_p5 = por %p819_p8, %p818_p0 }
  0x5c   : > { %p822_p12 = por %p821_p6, %p820_p5 }
  0x5e   : > { %p823_p4 = pnand %p822_p12, %p816_p3 }
  0x60   : > { %826 = shalt.err (!%p823_p4)
}
  0x61   : > { %s827_s24 = scalar_lea.vmem %s1106_s12, 128  ;;  %s932_s23 = smov [#allocation8]  }
  0x62   : > { %p828_p9 = scmp.ne.s32.totalorder %s1106_s12, %s827_s24  ;;  %s832_s11 = sshll.u32 %s932_s23, 4  ;;  %s833_s11 = int_to_ptr.vmem [resolvable:$false] %s832_s11 }
  0x63   : > { %s834_s6 = scalar_lea.vmem %s833_s11, 256  ;;  %p835_p7 = scmp.lt.s32.totalorder %s1106_s12, %s833_s11 }
  0x64   : > { %p830_p11 = pnand %p828_p9, %p1065_p2  ;;  %p836_p1 = scmp.lt.s32.totalorder %s834_s6, %s827_s24 }
  0x66   : > { %p831_p10 = pneg %p830_p11  ;;  %p837_p0 = por %p836_p1, %p835_p7 }
  0x68   : > { %p838_p8 = pnand %p837_p0, %p831_p10 }
  0x6a   : > { %841 = shalt.err (!%p838_p8)
}
  0x6b   : > { %691 = dma.hbm_to_vmem [thread:$0]  (!%p1269_p13), %s1096_s14, 128, %s1106_s12, %s1059_s16  }
  0x6c   : > { %p1270_p3 = scmp.ne.s32.totalorder %s1268_s7, 0 }
  0x6d   : > { %s1156_s25 = sand.u32 (!%p1270_p3), 1, %s912_s18   ;;  %p1271_p2 = scmp.ne.s32.totalorder (!%p1270_p3), %s1261_s28, 0 }
  0x6e   : > { %251 = sbr.rel (%p1270_p3) target bundleno = 638 (0x27e), region = 36  ;;  %s254_s15 = scalar_lea.sflag (!%p1270_p3), [#allocation4], %s1156_s25 }
  0x6f   : > { %s673_s26 = smul.u32 (!%p1270_p3), 3, %s1156_s25 }
  0x71   : > { %s257_s10 = scalar_lea.vmem (!%p1270_p3), [#allocation3], %s673_s26 }
  0x75   : > { %895 = dma.done.wait (%p1271_p2), %s254_s15, 48  }
  0x76   : > { %897 = vsyncadd (%p1271_p2), %s254_s15, 4294967248  ;;  %s262_s9 = sand.u32 1, %s999_s0   ;;  %s1166_s16 = sshll.u32 %s1156_s25, 3 }
  0x77   : > { %s263_s14 = scalar_lea.sflag [#allocation7], %s262_s9  ;;  %s266_s7 = scalar_lea.vmem [#allocation6], %s1166_s16 }
  0x78   : > { %899 = dma.done.wait (%p1271_p2), %s263_s14, 256  }
  0x79   : > { %901 = vsyncadd (%p1271_p2), %s263_s14, 4294967040  ;;  %v314_v0 = vld [vmem:[%s257_s10] sm:$0x7]  ;;  %s933_s12 = smov 112   ;;  %s934_s21 = smov 96   ;;  %v332_v1 = vlaneseq  ;;  %vm319_vm0 = vcmask 916480  }
  0x7a   : > { %316 = vrot.lane.b32.xlu0 %v314_v0, %s933_s12  ;;  %v313_v7 = vld [vmem:[%s257_s10] sm:$0x3]  ;;  %v935_v9 = vmov 1966171168   ;;  %vm326_vm1 = vcmask 785408   ;;  %s936_s0 = smov 126  }
  0x7b   : > { %v333_v2 = vand.u32 127, %v332_v1  ;;  %v1173_v6 = vshrl.u32 %v332_v1, 7  ;;  %v378_v10 = vunpack.c.l.s4 %v935_v9  ;;  %v452_v35 = vld [vmem:[%s266_s7] sm:$0xff]  ;;  %s275_s28 = scalar_lea.vmem [#allocation8], %s1166_s16  ;;  %s937_s30 = smov 1   ;;  %vm419_vm4 = vcmask 1031168  }
  0x7c   : > { %v453_v36 = vld [vmem:[%s275_s28] sm:$0xff]  ;;  %s449_s8 = sld [smem:[#allocation2]]  ;;  %vm394_vm7 = vcmask 7168   ;;  %s938_s27 = smov 127   ;;  %vm494_vm8 = vcmask 1043456   ;;  %vm496_vm9 = vcmask 1039360  }
  0x7d   : > { %v334_v5 = vadd.s32 128, %v333_v2  ;;  %v339_v12 = vand.u32 15, %v333_v2  ;;  %v1176_v14 = vsub.s32 0, %v1173_v6  ;;  %v1179_v18 = vsub.s32 1, %v1173_v6  ;;  %s670_s13 = sshll.u32 %s920_s20, 7  ;;  %s309_s2 = scalar_lea.vmem [#allocation9], %s1166_s16 }
  0x7e   : > { %323 = vrot.lane.b32.xlu0 %v314_v0, %s934_s21  ;;  %v411_v19 = vsub.s32 2, %v1173_v6  ;;  %v379_v21 = vunpack.c.0.s8 %v378_v10  ;;  %v454_v37 = vsub.f32 %v452_v35, %v453_v36  ;;  %s518_s24 = sshll.u32 %s309_s2, 4  ;;  %s1197_s6 = scalar_lea.hbm %s1250_s4, %s670_s13  ;;  %s1199_s24 = int_to_ptr.vmem [resolvable:$true] %s518_s24 }
  0x7f   : > { %v346_v13 = vand.u32 15, %v334_v5  ;;  %vm359_vm2 = vcmp.ne.s32.totalorder %v339_v12, 0  ;;  %vm398_vm5 = vcmp.ne.s32.totalorder %v339_v12, 15  ;;  %s502_s26 = scalar_lea.sflag [#allocation5], %s1156_s25  ;;  %s842_s15 = scalar_lea.vmem %s1199_s24, 128 }
  0x80   : > { %v382_v28 = vsub.s32 %v379_v21, %v1173_v6  ;;  %v472_v48 = vcombine.high %v454_v37, %v454_v37  ;;  %p843_p13 = scmp.ne.s32.totalorder %s1199_s24, %s842_s15  ;;  %p1272_p5 = scmp.ne.s32.totalorder %s1262_s29, 0 }
  0x81   : > { %vm360_vm3 = vcmp.ne.s32.totalorder %v346_v13, 0  ;;  %vm399_vm6 = vcmp.ne.s32.totalorder %v346_v13, 15  ;;  %s939_s20 = smov [#allocation9]  }
  0x82   : > { %v450_v55 = vstv %s449_s8  ;;  %p844_p6 = pnand %p843_p13, %p1272_p5  ;;  %s846_s10 = sshll.u32 %s939_s20, 4  ;;  %s847_s10 = int_to_ptr.vmem [resolvable:$false] %s846_s10 }
  0x83   : > { %s848_s9 = scalar_lea.vmem %s847_s10, 256  ;;  %p849_p4 = scmp.lt.s32.totalorder %s1199_s24, %s847_s10 }
  0x84   : > { %p845_p12 = pneg %p844_p6  ;;  %p850_p9 = scmp.lt.s32.totalorder %s848_s9, %s842_s15 }
  0x86   : > { %p851_p11 = por %p850_p9, %p849_p4 }
  0x88   : > { %p852_p10 = pnand %p851_p11, %p845_p12 }
  0xec   : > { %v317_v3 = vpop.permute.xlu0 %316 }
  0xed   : > { %v318_v4 = vrot.slane %v317_v3, 1 }
  0xef   : > { %v320_v8 = vsel %vm319_vm0, %v317_v3, %v318_v4 }
  0xf0   : > { %v324_v11 = vpop.permute.xlu0 %323  ;;  %v322_v16 = vadd.f32 %v320_v8, %v313_v7  ;;  %v330_v17 = vadd.f32 %v320_v8, %v314_v0 }
  0xf1   : > { %v325_v15 = vrot.slane %v324_v11, 1 }
  0xf3   : > { %v327_v20 = vsel %vm326_vm1, %v324_v11, %v325_v15 }
  0xf4   : > { %v329_v22 = vadd.f32 %v327_v20, %v322_v16  ;;  %v331_v23 = vadd.f32 %v330_v17, %v327_v20 }
  0xf6   : > { %v365_v24 = vrot.slane %v329_v22, %v1176_v14  ;;  %v369_v25 = vrot.slane %v329_v22, %v1179_v18  ;;  %v412_v26 = vrot.slane %v331_v23, %v411_v19  ;;  %v404_v27 = vrot.slane %v331_v23, %v1176_v14 }
  0xf7   : > { %v408_v32 = vrot.slane %v331_v23, %v1179_v18 }
  0xf8   : > { %v372_v29 = vsel %vm359_vm2, %v365_v24, 0.0  ;;  %v373_v30 = vsel %vm360_vm3, %v369_v25, 0.0  ;;  %417 = vrot.lane.b32.xlu0 %v412_v26, %s936_s0  ;;  %413 = vrot.lane.b32.xlu1 %v404_v27, %s936_s0 }
  0xf9   : > { %v376_v31 = vcombine.low %v372_v29, %v373_v30 }
  0xfb   : > { %v383_v33 = vrot.slane %v376_v31, %v382_v28 }
  0xfc   : > { %415 = vrot.lane.b32.xlu1 %v408_v32, %s936_s0 }
  0xfd   : > { %v390_v34 = vrot.slane %v383_v33, %v382_v28 }
 0x100   : > { %391 = vrot.lane.b32.xlu1 %v390_v34, %s937_s30 }
 0x104   : > { %473 = vrot.lane.b32.xlu1 %v454_v37, %s937_s30 }
 0x16a   : > { %v414_v38 = vpop.permute.xlu1 %413  ;;  %v418_v39 = vpop.permute.xlu0 %417 }
 0x16e   : > { %v416_v40 = vpop.permute.xlu1 %415 }
 0x16f   : > { %v420_v41 = vsel %vm419_vm4, %v414_v38, %v416_v40  ;;  %v421_v42 = vsel %vm419_vm4, %v416_v40, %v418_v39 }
 0x170   : > { %v424_v43 = vsel %vm398_vm5, %v420_v41, 0.0  ;;  %v425_v44 = vsel %vm399_vm6, %v421_v42, 0.0 }
 0x171   : > { %v428_v45 = vcombine.low %v424_v43, %v425_v44 }
 0x172   : > { %v392_v49 = vpop.permute.xlu1 %391 }
 0x173   : > { %v435_v46 = vrot.slane %v428_v45, %v382_v28  ;;  %v393_v50 = vrot.slane %v392_v49, 7 }
 0x175   : > { %v442_v47 = vrot.slane %v435_v46, %v382_v28  ;;  %v395_v51 = vsel %vm394_vm7, %v393_v50, %v392_v49 }
 0x176   : > { %v397_v54 = vadd.f32 %v395_v51, %v331_v23  ;;  %v474_v59 = vpop.permute.xlu1 %473 }
 0x177   : > { %443 = vrot.lane.b32.xlu0 %v442_v47, %s937_s30 }
 0x17b   : > { %475 = vrot.lane.b32.xlu0 %v472_v48, %s937_s30 }
 0x1e9   : > { %v444_v52 = vpop.permute.xlu0 %443 }
 0x1ea   : > { %v445_v53 = vrot.slane %v444_v52, 7 }
 0x1ec   : > { %v446_v56 = vsel %vm394_vm7, %v445_v53, %v444_v52 }
 0x1ed   : > { %v448_v57 = vadd.f32 %v446_v56, %v397_v54  ;;  %v476_v58 = vpop.permute.xlu0 %475 }
 0x1ee   : > { %v477_v61 = vsel %vm394_vm7, %v474_v59, %v476_v58 }
 0x1ef   : > { %v451_v60 = vmul.f32 %v450_v55, %v448_v57 }
 0x1f1   : > { %v467_v62 = vrot.slane %v451_v60, %v411_v19  ;;  %v459_v63 = vrot.slane %v451_v60, %v1176_v14  ;;  %v463_v0 = vrot.slane %v451_v60, %v1179_v18 }
 0x1f3   : > { %v483_v1 = vmul.f32 %v476_v58, %v467_v62  ;;  %v481_v2 = vmul.f32 %v474_v59, %v459_v63  ;;  %v482_v3 = vmul.f32 %v477_v61, %v463_v0 }
 0x1f5   : > { %v487_v4 = vcombine.low %v481_v2, %v482_v3  ;;  %490 = vrot.lane.b32.xlu0 %v483_v1, %s938_s27 }
 0x1f7   : > { %488 = vrot.lane.b32.xlu1 %v487_v4, %s938_s27 }
 0x267   : > { %v491_v5 = vpop.permute.xlu0 %490 }
 0x268   : > { %v493_v7 = vrot.slane %v491_v5, 4 }
 0x269   : > { %v489_v6 = vpop.permute.xlu1 %488 }
 0x26a   : > { %v492_v8 = vrot.slane %v489_v6, 4 }
 0x26c   : > { %v495_v9 = vsel %vm494_vm8, %v492_v8, %v493_v7 }
 0x26d   : > { %v497_v10 = vsel %vm496_vm9, %v489_v6, %v495_v9 }
 0x26e   : > { %v499_v11 = vadd.f32 %v497_v10, %v453_v36 }
 0x270   : > { %500 = vst [vmem:[%s309_s2] sm:$0xff] %v499_v11 }
 0x271   : > { %855 = shalt.err (!%p852_p10)
}
 0x272   : > { %s856_s25 = scalar_lea.hbm %s1197_s6, 128  ;;  %s860_s7 = scalar_lea.hbm %s1250_s4, 256 }
 0x273   : > { %p857_p7 = scmp.ne.s32.totalorder %s1197_s6, %s856_s25  ;;  %p861_p8 = scmp.lt.u32.totalorder %s1197_s6, %s1250_s4 }
 0x274   : > { %p862_p3 = scmp.lt.u32.totalorder %s860_s7, %s856_s25  ;;  %p864_p13 = scmp.lt.u32.totalorder %s856_s25, %s1197_s6 }
 0x275   : > { %p858_p1 = pnand %p857_p7, %p1272_p5 }
 0x276   : > { %p863_p2 = por %p862_p3, %p861_p8 }
 0x277   : > { %p859_p0 = pneg %p858_p1 }
 0x278   : > { %p865_p6 = por %p864_p13, %p863_p2 }
 0x27a   : > { %p866_p12 = pnand %p865_p6, %p859_p0 }
 0x27c   : > { %869 = shalt.err (!%p866_p12)
}
 0x27d   : > { %680 = dma.vmem_to_hbm [thread:$0]  (%p1272_p5), %s1199_s24, 128, %s1197_s6, %s502_s26  }
 0x27e PF: > { %s530_s0 = sand.u32 1, %s908_s17   ;;  %p1273_p4 = scmp.ne.s32.totalorder %s1264_s5, 0 }
 0x27f   : > { %p1274_p9 = scmp.ge.s32.totalorder %s928_s22, 2  ;;  %s531_s28 = scalar_lea.sflag [#allocation5], %s530_s0 }
 0x281   : > { %p693_p11 = pnand %p1274_p9, %p1273_p4 }
 0x283   : > { %903 = dma.done.wait (!%p693_p11), %s531_s28, 128  }
 0x284   : > { %905 = vsyncadd (!%p693_p11), %s531_s28, 4294967168  ;;  %s24_s22 = sadd.s32 1, %s928_s22   ;;  %s1275_s29 = sld [smem:[#allocation15_spill]] }
 0x285   : > { %p21_p10 = scmp.ge.s32.totalorder %s24_s22, 4   ;;  %s1276_s20 = sld [smem:[#allocation13_spill]] }
 0x286   : > { %s1277_s21 = sld [smem:[#allocation14_spill]]  ;;  %s1278_s17 = smov %s912_s18 }
 0x287   : > { %s1279_s18 = smov %s916_s19  ;;  %23 = sbr.rel (!%p21_p10) target bundleno = 11 (0xb), region = 105 }
 0x28a   : > { %s1280_s19 = smov %s1275_s29 }
 0x28e   :  { %536 = vsyncpa [#allocation4], 1 }
 0x28f   :  { %538 = vsyncpa [#allocation4 + $0x1], 1 }
 0x290   :  { %539 = vsyncpa [#allocation7], 1 }
 0x291   :  { %541 = vsyncpa [#allocation7 + $0x1], 1 }
 0x292   :  { %542 = vsyncpa [#allocation5], 1 }
 0x293   :  { %544 = vsyncpa [#allocation5 + $0x1], 1 }

</bundles_post_ra>
